<compile_context>
chip_gen: v5e
topology: v5e:2x2
jax: 0.10.0
libtpu: 0.0.40
codegen_flags: <defaults>
</compile_context>

<pallas_src>
import functools
import math

import jax
import jax.numpy as jnp
from jax import lax
from jax.experimental import pallas as pl
from jax.experimental.pallas import tpu as pltpu


def _round_up(x, m):
    return (x + m - 1) // m * m


# ---------------------------------------------------------------------------
# Pallas kernel: whole MemoryUnit forward for one (block_n, F_pad) row block.
# ---------------------------------------------------------------------------
def memory_unit_kernel(x_ref, w_ref, out_ref, att_ref, *,
                       shrink_thres, mem_dim, matmul_dtype):
    x = x_ref[...]                       # (bn, F_pad) f32, zero-padded columns
    w = w_ref[...]                       # (M_pad, F_pad) f32, zero-padded rows/cols

    # logits = x @ W^T -> (bn, M_pad).  dot_general contracting the last dims of
    # BOTH operands: MXU gets the transposed-RHS form directly (no XLU vxpose).
    logits = lax.dot_general(
        x.astype(matmul_dtype), w.astype(matmul_dtype),
        dimension_numbers=(((1,), (1,)), ((), ())),
        preferred_element_type=jnp.float32,
    )

    # Mask padded memory slots so they do not pollute the softmax.
    m_pad = logits.shape[1]
    if mem_dim < m_pad:
        mem_ids = lax.broadcasted_iota(jnp.int32, logits.shape, 1)
        logits = jnp.where(mem_ids < mem_dim, logits, jnp.float32(-1e30))

    # softmax over the memory axis (f32; exp and reciprocal go to the EUP).
    m = jnp.max(logits, axis=1, keepdims=True)
    e = jnp.exp(logits - m)
    att = e * pl.reciprocal(jnp.sum(e, axis=1, keepdims=True), approx=True)

    if shrink_thres > 0:
        # hard_shrink_relu: relu(a-l)*a/(|a-l|+eps) == a*(a-l)/((a-l)+eps) for a>l, else 0.
        shifted = att - jnp.float32(shrink_thres)
        shrunk = att * shifted * pl.reciprocal(shifted + jnp.float32(1e-12), approx=True)
        att = jnp.where(shifted > 0, shrunk, jnp.float32(0.0))
        # F.normalize(p=1, dim=1): divide by L1 norm clamped at 1e-12 (att >= 0 here).
        l1 = jnp.sum(att, axis=1, keepdims=True)
        att = att * pl.reciprocal(jnp.maximum(l1, jnp.float32(1e-12)), approx=True)

    # output = att @ W -> (bn, F_pad).  Padded W rows are zero -> no effect.
    out = jnp.dot(att.astype(matmul_dtype), w.astype(matmul_dtype),
                  preferred_element_type=jnp.float32)

    out_ref[...] = out.astype(out_ref.dtype)
    att_ref[...] = att.astype(att_ref.dtype)


# ---------------------------------------------------------------------------
# pallas_call wrapper: lane-dense padding, row-block grid, VMEM-resident weight.
# ---------------------------------------------------------------------------
def memory_unit_pallas(x, weight, shrink_thres, *,
                       block_n_max=256, matmul_dtype=jnp.bfloat16):
    """x: (N, fea_dim), weight: (mem_dim, fea_dim) -> (out (N,fea_dim), att (N,mem_dim))."""
    N, F = x.shape
    M, F2 = weight.shape
    assert F == F2

    LANE, SUBLANE = 128, 8
    F_pad = _round_up(F, LANE)
    M_pad = _round_up(M, LANE)
    block_n = min(block_n_max, _round_up(N, SUBLANE))
    N_pad = _round_up(N, block_n)

    # Zero-pad to lane-dense shapes. Padded x columns / W rows+cols are zero, so
    # the math is unchanged; padded memory slots are masked inside the kernel.
    x_p = jnp.pad(x.astype(jnp.float32), ((0, N_pad - N), (0, F_pad - F)))
    w_p = jnp.pad(weight.astype(jnp.float32), ((0, M_pad - M), (0, F_pad - F)))

    kernel = functools.partial(
        memory_unit_kernel,
        shrink_thres=float(shrink_thres), mem_dim=M, matmul_dtype=matmul_dtype)

    out_p, att_p = pl.pallas_call(
        kernel,
        out_shape=(
            jax.ShapeDtypeStruct((N_pad, F_pad), jnp.float32),
            jax.ShapeDtypeStruct((N_pad, M_pad), jnp.float32),
        ),
        grid_spec=pltpu.PrefetchScalarGridSpec(
            num_scalar_prefetch=0,
            grid=(N_pad // block_n,),
            in_specs=[
                pl.BlockSpec((block_n, F_pad), lambda i: (i, 0),
                             memory_space=pltpu.MemorySpace.VMEM),
                # constant index_map: W stays VMEM-resident across row blocks
                pl.BlockSpec((M_pad, F_pad), lambda i: (0, 0),
                             memory_space=pltpu.MemorySpace.VMEM),
            ],
            out_specs=(
                pl.BlockSpec((block_n, F_pad), lambda i: (i, 0),
                             memory_space=pltpu.MemorySpace.VMEM),
                pl.BlockSpec((block_n, M_pad), lambda i: (i, 0),
                             memory_space=pltpu.MemorySpace.VMEM),
            ),
        ),
        compiler_params=pltpu.CompilerParams(
            dimension_semantics=("parallel",),   # v7x: row blocks split across TCs
            vmem_limit_bytes=32 * 1024 * 1024,   # headroom on v7x's 64 MiB VMEM
        ),
    )(x_p, w_p)

    return out_p[:N, :F], att_p[:N, :M]


# ---------------------------------------------------------------------------
# MemModule1.forward: single fused 6-D transpose per direction (layout glue).
# ---------------------------------------------------------------------------
def mem_module1_forward(x_nchw, weight, mem_dim, shrink_thres=0.0025):
    """Equivalent of MemModule1.forward. x_nchw: (B, C, H, W) with H == W == 8."""
    B, C, H, W = x_nchw.shape
    # NCHW -> (n_windows, 4*C): one transpose instead of permute(0,2,3,1) +
    # window_partition's internal permute (feature order = (wh, ww, c)).
    xw = x_nchw.reshape(B, C, H // 2, 2, W // 2, 2)
    xw = jnp.transpose(xw, (0, 2, 4, 3, 5, 1)).reshape(B * (H // 2) * (W // 2), 4 * C)

    y, att = memory_unit_pallas(xw, weight, shrink_thres)

    # (n_windows, 4*C) -> NCHW: one transpose instead of window_reverse + permute.
    y = y.reshape(B, H // 2, W // 2, 2, 2, C)
    y = jnp.transpose(y, (0, 5, 1, 3, 2, 4)).reshape(B, C, H, W)

    att = att.reshape(B, H // 2, W // 2, mem_dim)   # (B, 4, 4, mem_dim) for H=W=8
    att = jnp.transpose(att, (0, 3, 1, 2))          # (B, mem_dim, 4, 4)
    return {"output": y, "att": att}


# ---------------------------------------------------------------------------
# Pure-JAX f32 reference (mirrors the PyTorch formulas) for a sanity check.
# ---------------------------------------------------------------------------
def _memory_unit_ref(x, weight, shrink_thres):
    logits = x @ weight.T
    att = jax.nn.softmax(logits, axis=1)
    if shrink_thres > 0:
        shifted = att - shrink_thres
        att = jnp.maximum(shifted, 0.0) * att / (jnp.abs(shifted) + 1e-12)
        att = att / jnp.maximum(jnp.sum(jnp.abs(att), axis=1, keepdims=True), 1e-12)
    return att @ weight, att


if __name__ == "__main__":
    # att.view(B, 4, 4, mem_dim) in the original module forces H = W = 8;
    # fea_dim = 4 * C (2x2 window of C channels).
    B, C, H, W = 2, 4, 8, 8
    fea_dim = 4 * C          # 16
    mem_dim = 32
    shrink_thres = 0.0025

    key = jax.random.PRNGKey(0)
    k_x, k_w = jax.random.split(key)

    # Parameter init matching reset_parameters: U(-stdv, stdv)
    stdv = 1.0 / math.sqrt(fea_dim)
    weight = jax.random.uniform(k_w, (mem_dim, fea_dim), dtype=jnp.float32,
                                minval=-stdv, maxval=stdv)
    x = jax.random.normal(k_x, (B, C, H, W), dtype=jnp.float32)

    fwd = jax.jit(functools.partial(mem_module1_forward, mem_dim=mem_dim,
                                    shrink_thres=shrink_thres))
    result = fwd(x, weight)
    jax.block_until_ready(result)

    assert result["output"].shape == (B, C, H, W)
    assert result["att"].shape == (B, mem_dim, 4, 4)

    # Numerical sanity check vs. pure-JAX f32 reference (loose tolerance since the
    # kernel feeds the MXU bf16 inputs per the perf review; accumulation is f32).
    xw = jnp.transpose(x.reshape(B, C, H // 2, 2, W // 2, 2),
                       (0, 2, 4, 3, 5, 1)).reshape(-1, fea_dim)
    y_ref, att_ref = _memory_unit_ref(xw, weight, shrink_thres)
    y_ref = jnp.transpose(y_ref.reshape(B, H // 2, W // 2, 2, 2, C),
                          (0, 5, 1, 3, 2, 4)).reshape(B, C, H, W)
    att_ref = jnp.transpose(att_ref.reshape(B, H // 2, W // 2, mem_dim), (0, 3, 1, 2))
    assert jnp.allclose(result["output"], y_ref, atol=2e-2), \
        float(jnp.max(jnp.abs(result["output"] - y_ref)))
    assert jnp.allclose(result["att"], att_ref, atol=2e-2), \
        float(jnp.max(jnp.abs(result["att"] - att_ref)))

    print("KERNEL_OK")
</pallas_src>

<mosaic_0001>
module attributes {stable_mosaic.version = 11 : i64} {
  func.func @memory_unit_kernel(%arg0: i32, %arg1: memref<32x128xf32, #tpu.memory_space<vmem>>, %arg2: memref<128x128xf32, #tpu.memory_space<vmem>>, %arg3: memref<32x128xf32, #tpu.memory_space<vmem>>, %arg4: memref<32x128xf32, #tpu.memory_space<vmem>>) attributes {dimension_semantics = [#tpu.dimension_semantics<parallel>], iteration_bounds = array<i64: 1>, scalar_prefetch = 0 : i64, scratch_operands = 0 : i64, tpu.core_type = #tpu.core_type<tc>, window_params = [{transform_indices = @transform_0, window_bounds = array<i64: 32, 128>}, {pipeline_mode = #tpu.pipeline_mode<synchronous>, transform_indices = @transform_1, window_bounds = array<i64: 128, 128>}, {transform_indices = @transform_2, window_bounds = array<i64: 32, 128>}, {transform_indices = @transform_3, window_bounds = array<i64: 32, 128>}]} {
    %c0 = arith.constant 0 : index
    %c0_0 = arith.constant 0 : index
    %0 = vector.load %arg1[%c0, %c0_0] : memref<32x128xf32, #tpu.memory_space<vmem>>, vector<32x128xf32>
    %c0_1 = arith.constant 0 : index
    %c0_2 = arith.constant 0 : index
    %1 = vector.load %arg2[%c0_1, %c0_2] : memref<128x128xf32, #tpu.memory_space<vmem>>, vector<128x128xf32>
    %2 = arith.truncf %0 : vector<32x128xf32> to vector<32x128xbf16>
    %3 = arith.truncf %1 : vector<128x128xf32> to vector<128x128xbf16>
    %cst = arith.constant dense<0.000000e+00> : vector<32x128xf32>
    %4 = tpu.matmul %2, %3, %cst {dimension_numbers = #tpu.dot_dimension_numbers<[1], [1], [0], [0], [0, 0, 1, 0], [], []>} : vector<32x128xbf16>, vector<128x128xbf16>, vector<32x128xf32> -> vector<32x128xf32>
    %5 = tpu.iota {dimensions = array<i32: 1>} : vector<32x128xi32>
    %c32_i32 = arith.constant 32 : i32
    %6 = vector.broadcast %c32_i32 : i32 to vector<32x128xi32>
    %7 = arith.cmpi slt, %5, %6 : vector<32x128xi32>
    %cst_3 = arith.constant -1.000000e+30 : f32
    %8 = vector.broadcast %cst_3 : f32 to vector<32x128xf32>
    %9 = arith.select %7, %4, %8 : vector<32x128xi1>, vector<32x128xf32>
    %cst_4 = arith.constant dense<0xFF800000> : vector<32xf32>
    %10 = vector.multi_reduction <maximumf>, %9, %cst_4 [1] : vector<32x128xf32> to vector<32xf32>
    %11 = vector.shape_cast %10 : vector<32xf32> to vector<32x1xf32>
    %12 = vector.broadcast %11 : vector<32x1xf32> to vector<32x128xf32>
    %13 = arith.subf %9, %12 : vector<32x128xf32>
    %14 = math.exp %13 : vector<32x128xf32>
    %cst_5 = arith.constant dense<0.000000e+00> : vector<32xf32>
    %15 = vector.multi_reduction <add>, %14, %cst_5 [1] : vector<32x128xf32> to vector<32xf32>
    %16 = vector.shape_cast %15 : vector<32xf32> to vector<32x1xf32>
    %17 = tpu.reciprocal %16 {approx = true} : vector<32x1xf32> -> vector<32x1xf32>
    %18 = vector.broadcast %17 : vector<32x1xf32> to vector<32x128xf32>
    %19 = arith.mulf %14, %18 : vector<32x128xf32>
    %cst_6 = arith.constant 2.500000e-03 : f32
    %20 = vector.broadcast %cst_6 : f32 to vector<32x128xf32>
    %21 = arith.subf %19, %20 : vector<32x128xf32>
    %22 = arith.mulf %19, %21 : vector<32x128xf32>
    %cst_7 = arith.constant 9.99999996E-13 : f32
    %23 = vector.broadcast %cst_7 : f32 to vector<32x128xf32>
    %24 = arith.addf %21, %23 : vector<32x128xf32>
    %25 = tpu.reciprocal %24 {approx = true} : vector<32x128xf32> -> vector<32x128xf32>
    %26 = arith.mulf %22, %25 : vector<32x128xf32>
    %cst_8 = arith.constant 0.000000e+00 : f32
    %27 = vector.broadcast %cst_8 : f32 to vector<32x128xf32>
    %28 = arith.cmpf ogt, %21, %27 : vector<32x128xf32>
    %cst_9 = arith.constant 0.000000e+00 : f32
    %29 = vector.broadcast %cst_9 : f32 to vector<32x128xf32>
    %30 = arith.select %28, %26, %29 : vector<32x128xi1>, vector<32x128xf32>
    %cst_10 = arith.constant dense<0.000000e+00> : vector<32xf32>
    %31 = vector.multi_reduction <add>, %30, %cst_10 [1] : vector<32x128xf32> to vector<32xf32>
    %32 = vector.shape_cast %31 : vector<32xf32> to vector<32x1xf32>
    %cst_11 = arith.constant 9.99999996E-13 : f32
    %33 = vector.broadcast %cst_11 : f32 to vector<32x1xf32>
    %34 = arith.maximumf %32, %33 : vector<32x1xf32>
    %35 = tpu.reciprocal %34 {approx = true} : vector<32x1xf32> -> vector<32x1xf32>
    %36 = vector.broadcast %35 : vector<32x1xf32> to vector<32x128xf32>
    %37 = arith.mulf %30, %36 : vector<32x128xf32>
    %38 = arith.truncf %37 : vector<32x128xf32> to vector<32x128xbf16>
    %39 = arith.truncf %1 : vector<128x128xf32> to vector<128x128xbf16>
    %cst_12 = arith.constant dense<0.000000e+00> : vector<32x128xf32>
    %40 = tpu.matmul %38, %39, %cst_12 {dimension_numbers = #tpu.dot_dimension_numbers<[1], [0], [0], [1], [0, 0, 1, 1], [], []>} : vector<32x128xbf16>, vector<128x128xbf16>, vector<32x128xf32> -> vector<32x128xf32>
    %c0_13 = arith.constant 0 : index
    %c0_14 = arith.constant 0 : index
    %41 = vector.load %arg3[%c0_13, %c0_14] : memref<32x128xf32, #tpu.memory_space<vmem>>, vector<32x128xf32>
    tpu.vector_store %arg3[%c0_13, %c0_14], %40 {strides = array<i32>} : memref<32x128xf32, #tpu.memory_space<vmem>>, vector<32x128xf32>,
    %c0_15 = arith.constant 0 : index
    %c0_16 = arith.constant 0 : index
    %42 = vector.load %arg4[%c0_15, %c0_16] : memref<32x128xf32, #tpu.memory_space<vmem>>, vector<32x128xf32>
    tpu.vector_store %arg4[%c0_15, %c0_16], %37 {strides = array<i32>} : memref<32x128xf32, #tpu.memory_space<vmem>>, vector<32x128xf32>,
    return
  }
  func.func @transform_0(%arg0: i32) -> (i32, i32) {
    %c0_i32 = arith.constant 0 : i32
    %c0_i32_0 = arith.constant 0 : i32
    return %arg0, %c0_i32 : i32, i32
  }
  func.func @transform_1(%arg0: i32) -> (i32, i32) {
    %c0_i32 = arith.constant 0 : i32
    %c0_i32_0 = arith.constant 0 : i32
    %c0_i32_1 = arith.constant 0 : i32
    return %c0_i32, %c0_i32_0 : i32, i32
  }
  func.func @transform_2(%arg0: i32) -> (i32, i32) {
    %c0_i32 = arith.constant 0 : i32
    %c0_i32_0 = arith.constant 0 : i32
    return %arg0, %c0_i32 : i32, i32
  }
  func.func @transform_3(%arg0: i32) -> (i32, i32) {
    %c0_i32 = arith.constant 0 : i32
    %c0_i32_0 = arith.constant 0 : i32
    return %arg0, %c0_i32 : i32, i32
  }
}

</mosaic_0001>

<bundles_post_ra>
// kernel: mem_module1_forward.1
= control target key start
LH: loop header
LB: loop body
LE: loop exit
PB: predicated region body
PF: predicated region fallthrough
CT: control target
= control target key end

     0   :  { %s376_s0 = inlined_call_operand.vmem [shape: f32[32,128], index: 0, kind: input, shape index: {}]   ;;  %s377_s1 = inlined_call_operand.vmem [shape: f32[128,128], index: 1, kind: input, shape index: {}]   ;;  %s378_s2 = inlined_call_operand.vmem [shape: f32[32,128], index: 2, kind: output, shape index: {0}]   ;;  %s379_s3 = inlined_call_operand.hbm [shape: f32[32,128], index: 3, kind: output, shape index: {1}]  }
   0x1   :  { %v32_v0 = vld [vmem:[%s377_s1 + $0x70] sm:$0xff]  ;;  %v33_v1 = vld [vmem:[%s377_s1 + $0x78] sm:$0xff]  ;;  %v30_v3 = vld [vmem:[%s377_s1 + $0x60] sm:$0xff] }
   0x2   :  { %v43_v2 = vpack.c.bf16 %v33_v1, %v32_v0  ;;  %v31_v4 = vld [vmem:[%s377_s1 + $0x68] sm:$0xff] }
   0x4   :  { %44 = vmatpush.bf16.xpose.msra.mxu0 %v43_v2  ;;  %209 = vmatpush.bf16.xpose.msra.mxu2 %v43_v2 }
   0x5   :  { %156 = vmatpush.bf16.msra.mxu1 %v43_v2 }
   0x6   :  { %9 = vsyncpa [#allocation3], 0  ;;  %v42_v5 = vpack.c.bf16 %v31_v4, %v30_v3  ;;  %v28_v6 = vld [vmem:[%s377_s1 + $0x50] sm:$0xff]  ;;  %v29_v7 = vld [vmem:[%s377_s1 + $0x58] sm:$0xff]  ;;  %v63_v30 = vlaneseq  ;;  %s191_s27 = sshll.u32 %s379_s3, 4  ;;  %s279_s28 = smov 128   ;;  %s192_s27 = int_to_ptr.hbm [resolvable:$true] %s191_s27 }
   0x7   :  { %v41_v8 = vpack.c.bf16 %v29_v7, %v28_v6  ;;  %v26_v9 = vld [vmem:[%s377_s1 + $0x40] sm:$0xff]  ;;  %v27_v10 = vld [vmem:[%s377_s1 + $0x48] sm:$0xff]  ;;  %v24_v12 = vld [vmem:[%s377_s1 + $0x30] sm:$0xff]  ;;  %s280_s29 = smov 8  }
   0x8   :  { %v40_v11 = vpack.c.bf16 %v27_v10, %v26_v9  ;;  %v25_v13 = vld [vmem:[%s377_s1 + $0x38] sm:$0xff]  ;;  %v22_v15 = vld [vmem:[%s377_s1 + $0x20] sm:$0xff]  ;;  %v23_v16 = vld [vmem:[%s377_s1 + $0x28] sm:$0xff]  ;;  %v64_v31 = vand.u32 127, %v63_v30 }
   0x9   :  { %157 = vmatpush.bf16.msra.mxu1 %v42_v5  ;;  %v39_v14 = vpack.c.bf16 %v25_v13, %v24_v12  ;;  %v38_v17 = vpack.c.bf16 %v23_v16, %v22_v15  ;;  %v20_v18 = vld [vmem:[%s377_s1 + $0x10] sm:$0xff]  ;;  %v21_v19 = vld [vmem:[%s377_s1 + $0x18] sm:$0xff]  ;;  %v18_v21 = vld [vmem:[%s377_s1] sm:$0xff] }
   0xa   :  { %v37_v20 = vpack.c.bf16 %v21_v19, %v20_v18  ;;  %v19_v22 = vld [vmem:[%s377_s1 + $0x8] sm:$0xff]  ;;  %v14_v24 = vld [vmem:[%s376_s0] sm:$0xff]  ;;  %v16_v26 = vld [vmem:[%s376_s0 + $0x10] sm:$0xff]  ;;  %vm65_vm0 = vcmp.lt.s32.totalorder %v64_v31, 32 }
   0xb   :  { %v36_v23 = vpack.c.bf16 %v19_v22, %v18_v21  ;;  %v15_v25 = vld [vmem:[%s376_s0 + $0x8] sm:$0xff]  ;;  %v17_v27 = vld [vmem:[%s376_s0 + $0x18] sm:$0xff]  ;;  %s278_s0 = smov [#allocation2]  }
   0xc   :  { %45 = vmatpush.bf16.xpose.msra.mxu0 %v42_v5  ;;  %210 = vmatpush.bf16.xpose.msra.mxu2 %v42_v5  ;;  %v34_v28 = vpack.c.bf16 %v15_v25, %v14_v24  ;;  %v35_v29 = vpack.c.bf16 %v17_v27, %v16_v26  ;;  %s189_s24 = sshll.u32 %s278_s0, 4  ;;  %s190_s24 = int_to_ptr.vmem [resolvable:$true] %s189_s24 }
   0xd   :  { %158 = vmatpush.bf16.msra.mxu1 %v41_v8 }
  0x11   :  { %159 = vmatpush.bf16.msra.mxu1 %v40_v11 }
  0x14   :  { %46 = vmatpush.bf16.xpose.msra.mxu0 %v41_v8  ;;  %211 = vmatpush.bf16.xpose.msra.mxu2 %v41_v8 }
  0x15   :  { %160 = vmatpush.bf16.msra.mxu1 %v39_v14 }
  0x19   :  { %161 = vmatpush.bf16.msra.mxu1 %v38_v17 }
  0x1c   :  { %47 = vmatpush.bf16.xpose.msra.mxu0 %v40_v11  ;;  %212 = vmatpush.bf16.xpose.msra.mxu2 %v40_v11 }
  0x1d   :  { %162 = vmatpush.bf16.msra.mxu1 %v37_v20 }
  0x21   :  { %163 = vmatpush.bf16.msra.mxu1 %v36_v23 }
  0x24   :  { %48 = vmatpush.bf16.xpose.msra.mxu0 %v39_v14  ;;  %213 = vmatpush.bf16.xpose.msra.mxu2 %v39_v14 }
  0x2c   :  { %49 = vmatpush.bf16.xpose.msra.mxu0 %v38_v17  ;;  %214 = vmatpush.bf16.xpose.msra.mxu2 %v38_v17 }
  0x34   :  { %50 = vmatpush.bf16.xpose.msra.mxu0 %v37_v20  ;;  %215 = vmatpush.bf16.xpose.msra.mxu2 %v37_v20 }
  0x3c   :  { %51 = vmatpush.bf16.xpose.msra.mxu0 %v36_v23  ;;  %216 = vmatpush.bf16.xpose.msra.mxu2 %v36_v23 }
  0x43   :  { %52 = vmatmul.bf16.vlgmr.msra.gmra.mxu0 %v34_v28  ;;  %57 = vmatmul.bf16.vlgmr.msra.gmra.mxu2 %v35_v29 }
  0xc0   :  { %v53_v32 = vpop.f32.mrf.mxu0 }
  0xc1   :  { %v66_v33 = vsel %vm65_vm0, %v53_v32, -1e+30 }
  0xc2   :  { %70 = vmax.xlane.f32.xlu0 %v66_v33 }
  0xc6   :  { %v58_v34 = vpop.f32.mrf.mxu2 }
  0xc7   :  { %v68_v35 = vsel %vm65_vm0, %v58_v34, -1e+30 }
  0xc8   :  { %74 = vmax.xlane.f32.xlu1 %v68_v35  ;;  %v55_v36 = vpop.f32.mrf.mxu0 }
  0xc9   :  { %v67_v37 = vsel %vm65_vm0, %v55_v36, -1e+30 }
  0xca   :  { %72 = vmax.xlane.f32.xlu0 %v67_v37 }
  0xce   :  { %v60_v38 = vpop.f32.mrf.mxu2 }
  0xcf   :  { %v69_v39 = vsel %vm65_vm0, %v60_v38, -1e+30 }
  0xd0   :  { %76 = vmax.xlane.f32.xlu1 %v69_v39 }
 0x135   :  { %v71_v40 = vpop.xlane.xlu0 %70 }
 0x136   :  { %v78_v41 = vsub.f32 %v66_v33, %v71_v40 }
 0x138   :  { %v82_v42 = vmul.f32 1.442695, %v78_v41 }
 0x13a   :  { %220 = vpow2.f32 %v82_v42 }
 0x13b   :  { %v75_v43 = vpop.xlane.xlu1 %74 }
 0x13c   :  { %v80_v44 = vsub.f32 %v68_v35, %v75_v43 }
 0x13d   :  { %v73_v45 = vpop.xlane.xlu0 %72 }
 0x13e   :  { %v86_v46 = vmul.f32 1.442695, %v80_v44  ;;  %v79_v47 = vsub.f32 %v67_v37, %v73_v45 }
 0x140   :  { %v221_v48 = vpop.eup %220  ;;  %222 = vpow2.f32 %v86_v46  ;;  %v84_v49 = vmul.f32 1.442695, %v79_v47 }
 0x141   :  { %90 = vadd.xlane.f32.xlu2 %v221_v48 }
 0x142   :  { %224 = vpow2.f32 %v84_v49 }
 0x143   :  { %v77_v50 = vpop.xlane.xlu1 %76 }
 0x144   :  { %v81_v51 = vsub.f32 %v69_v39, %v77_v50 }
 0x146   :  { %v223_v52 = vpop.eup %222  ;;  %v88_v53 = vmul.f32 1.442695, %v81_v51 }
 0x147   :  { %94 = vadd.xlane.f32.xlu0 %v223_v52 }
 0x148   :  { %v225_v54 = vpop.eup %224  ;;  %226 = vpow2.f32 %v88_v53 }
 0x149   :  { %92 = vadd.xlane.f32.xlu2 %v225_v54 }
 0x14e   :  { %v227_v55 = vpop.eup %226 }
 0x14f   :  { %96 = vadd.xlane.f32.xlu1 %v227_v55 }
 0x1b4   :  { %v91_v56 = vpop.xlane.xlu2 %90 }
 0x1b5   :  { %228 = vrcp.f32 %v91_v56 }
 0x1ba   :  { %v95_v57 = vpop.xlane.xlu0 %94 }
 0x1bb   :  { %v229_v58 = vpop.eup %228  ;;  %230 = vrcp.f32 %v95_v57 }
 0x1bc   :  { %v93_v59 = vpop.xlane.xlu2 %92  ;;  %v102_v60 = vmul.f32 %v229_v58, %v221_v48 }
 0x1bd   :  { %232 = vrcp.f32 %v93_v59 }
 0x1be   :  { %v205_v61 = vadd.f32 -0.0025, %v102_v60 }
 0x1c0   :  { %v114_v62 = vadd.f32 1e-12, %v205_v61  ;;  %v110_v7 = vmul.f32 %v205_v61, %v102_v60  ;;  %vm126_vm1 = vcmp.gt.f32.partialorder %v205_v61, 0.0 }
 0x1c1   :  { %v231_v63 = vpop.eup %230 }
 0x1c2   :  { %v97_v0 = vpop.xlane.xlu1 %96  ;;  %234 = vrcp.f32 %v114_v62  ;;  %v104_v1 = vmul.f32 %v231_v63, %v223_v52 }
 0x1c3   :  { %v233_v2 = vpop.eup %232  ;;  %236 = vrcp.f32 %v97_v0 }
 0x1c4   :  { %v207_v3 = vadd.f32 -0.0025, %v104_v1  ;;  %v103_v4 = vmul.f32 %v233_v2, %v225_v54 }
 0x1c6   :  { %v116_v5 = vadd.f32 1e-12, %v207_v3  ;;  %v206_v6 = vadd.f32 -0.0025, %v103_v4  ;;  %v112_v15 = vmul.f32 %v207_v3, %v104_v1  ;;  %vm128_vm2 = vcmp.gt.f32.partialorder %v207_v3, 0.0 }
 0x1c8   :  { %v235_v8 = vpop.eup %234  ;;  %238 = vrcp.f32 %v116_v5  ;;  %v115_v9 = vadd.f32 1e-12, %v206_v6  ;;  %v111_v19 = vmul.f32 %v206_v6, %v103_v4  ;;  %vm127_vm3 = vcmp.gt.f32.partialorder %v206_v6, 0.0 }
 0x1c9   :  { %v237_v10 = vpop.eup %236  ;;  %v122_v11 = vmul.f32 %v235_v8, %v110_v7 }
 0x1ca   :  { %240 = vrcp.f32 %v115_v9  ;;  %v105_v12 = vmul.f32 %v237_v10, %v227_v55 }
 0x1cb   :  { %v130_v13 = vsel %vm126_vm1, %v122_v11, 0.0 }
 0x1cc   :  { %134 = vadd.xlane.f32.xlu2 %v130_v13  ;;  %v208_v14 = vadd.f32 -0.0025, %v105_v12 }
 0x1ce   :  { %v239_v16 = vpop.eup %238  ;;  %v117_v17 = vadd.f32 1e-12, %v208_v14  ;;  %v113_v24 = vmul.f32 %v208_v14, %v105_v12  ;;  %vm129_vm4 = vcmp.gt.f32.partialorder %v208_v14, 0.0 }
 0x1cf   :  { %v124_v18 = vmul.f32 %v239_v16, %v112_v15 }
 0x1d0   :  { %v241_v20 = vpop.eup %240  ;;  %242 = vrcp.f32 %v117_v17 }
 0x1d1   :  { %v132_v21 = vsel %vm128_vm2, %v124_v18, 0.0  ;;  %v123_v22 = vmul.f32 %v241_v20, %v111_v19 }
 0x1d2   :  { %138 = vadd.xlane.f32.xlu1 %v132_v21 }
 0x1d3   :  { %v131_v23 = vsel %vm127_vm3, %v123_v22, 0.0 }
 0x1d4   :  { %136 = vadd.xlane.f32.xlu0 %v131_v23 }
 0x1d6   :  { %v243_v25 = vpop.eup %242 }
 0x1d7   :  { %v125_v26 = vmul.f32 %v243_v25, %v113_v24 }
 0x1d9   :  { %v133_v27 = vsel %vm129_vm4, %v125_v26, 0.0 }
 0x1da   :  { %140 = vadd.xlane.f32.xlu2 %v133_v27 }
 0x23f   :  { %v135_v28 = vpop.xlane.xlu2 %134 }
 0x240   :  { %v142_v29 = vmax.f32 %v135_v28, 1e-12 }
 0x242   :  { %244 = vrcp.f32 %v142_v29 }
 0x245   :  { %v139_v30 = vpop.xlane.xlu1 %138 }
 0x246   :  { %v144_v31 = vmax.f32 %v139_v30, 1e-12 }
 0x247   :  { %v137_v32 = vpop.xlane.xlu0 %136 }
 0x248   :  { %v245_v33 = vpop.eup %244  ;;  %246 = vrcp.f32 %v144_v31  ;;  %v143_v34 = vmax.f32 %v137_v32, 1e-12 }
 0x249   :  { %v150_v35 = vmul.f32 %v245_v33, %v130_v13 }
 0x24a   :  { %248 = vrcp.f32 %v143_v34 }
 0x24b   :  { %179 = vst [vmem:[#allocation2] sm:$0xff] %v150_v35 }
 0x24d   :  { %v141_v36 = vpop.xlane.xlu2 %140 }
 0x24e   :  { %v247_v37 = vpop.eup %246  ;;  %v145_v38 = vmax.f32 %v141_v36, 1e-12 }
 0x24f   :  { %v152_v39 = vmul.f32 %v247_v37, %v132_v21 }
 0x250   :  { %v249_v40 = vpop.eup %248  ;;  %250 = vrcp.f32 %v145_v38 }
 0x251   :  { %v151_v41 = vmul.f32 %v249_v40, %v131_v23  ;;  %181 = vst [vmem:[#allocation2 + $0x10] sm:$0xff] %v152_v39 }
 0x253   :  { %v154_v42 = vpack.c.bf16 %v151_v41, %v150_v35  ;;  %180 = vst [vmem:[#allocation2 + $0x8] sm:$0xff] %v151_v41 }
 0x255   :  { %164 = vmatmul.bf16.vlgmr.msra.gmra.mxu1 %v154_v42 }
 0x256   :  { %v251_v43 = vpop.eup %250 }
 0x257   :  { %v153_v44 = vmul.f32 %v251_v43, %v133_v27 }
 0x259   :  { %182 = vst [vmem:[#allocation2 + $0x18] sm:$0xff] %v153_v44  ;;  %v155_v45 = vpack.c.bf16 %v153_v44, %v152_v39 }
 0x25a   :  { %197 = dma.vmem_to_hbm [thread:$0]  %s190_s24, 512, %s192_s27, [#allocation3], %s279_s28, %s279_s28, %s280_s29  }
 0x265   :  { %169 = vmatmul.bf16.gmra.mxu1 %v155_v45 }
 0x2d2   :  { %v165_v46 = vpop.f32.mrf.mxu1 }
 0x2d3   :  { %175 = vst [vmem:[%s378_s2] sm:$0xff] %v165_v46 }
 0x2da   :  { %v167_v47 = vpop.f32.mrf.mxu1 }
 0x2db   :  { %176 = vst [vmem:[%s378_s2 + $0x8] sm:$0xff] %v167_v47 }
 0x2e2   :  { %v170_v48 = vpop.f32.mrf.mxu1 }
 0x2e3   :  { %177 = vst [vmem:[%s378_s2 + $0x10] sm:$0xff] %v170_v48 }
 0x2ea   :  { %v172_v49 = vpop.f32.mrf.mxu1 }
 0x2eb   :  { %178 = vst [vmem:[%s378_s2 + $0x18] sm:$0xff] %v172_v49 }
 0x2ec   :  { %276 = dma.done.wait [#allocation3], 512  }
 0x2ed   :  { %277 = vsyncadd [#allocation3], 4294966784 }
 0x2ee   :  { %204 = vsyncpa [#allocation3], 1 }

</bundles_post_ra>
